<compile_context>
chip_gen: v5e
topology: v5e:2x2
jax: 0.10.0
libtpu: 0.0.40
codegen_flags: <defaults>
</compile_context>

<pallas_src>
import jax
import jax.numpy as jnp
from jax import lax
from jax.experimental import pallas as pl
from jax.experimental.pallas import tpu as pltpu


def cell_lstm_seq_kernel(x_ref, w_xh_ref, w_gates_ref, c0_ref,
                         c_out_ref, h_out_ref):
    """Runs the LSTM-cell recurrence over the leading time axis of x_ref.

    x_ref       : (T, B, F)  input sequence (VMEM resident)
    w_xh_ref    : (F, U)
    w_gates_ref : (U, 4U)    [w_h_c | w_h_u | w_h_f | w_h_o]
    c0_ref      : (B, U)     initial cell state (already batch-broadcast)
    c_out_ref   : (T, B, U)  cell state after each step
    h_out_ref   : (T, B, U)  hidden state after each step
    """
    T = x_ref.shape[0]
    U = w_xh_ref.shape[1]

    # Weights read once; resident for every timestep of the recurrence.
    w_xh = w_xh_ref[...]
    w_gates = w_gates_ref[...]

    def step(t, c_prev):
        # x = inputs_t @ w_xh                              -> (B, U)
        x = jnp.dot(x_ref[t], w_xh, preferred_element_type=jnp.float32)
        # All four gates in one lane-dense MXU push        -> (B, 4U)
        gates = jnp.dot(x, w_gates, preferred_element_type=jnp.float32)

        # TODO(synk): for large U, replace the sub-128-lane slices below with a
        # masked full-slab activation + pltpu.roll alignment (activations on
        # full vregs, alignment on the XLU slot). At U=32 the win is noise.
        c_tilda = jnp.tanh(gates[:, 0 * U:1 * U])
        gamma_u = jax.nn.sigmoid(gates[:, 1 * U:2 * U])
        gamma_f = jax.nn.sigmoid(gates[:, 2 * U:3 * U])
        gamma_o = jax.nn.sigmoid(gates[:, 3 * U:4 * U])

        c_t = gamma_u * c_tilda + gamma_f * c_prev
        h = gamma_o * jnp.tanh(c_t)

        c_out_ref[t] = c_t.astype(c_out_ref.dtype)
        h_out_ref[t] = h.astype(h_out_ref.dtype)
        return c_t

    # Short static trip count -> full unroll for LLO scheduler visibility.
    lax.fori_loop(0, T, step, c0_ref[...], unroll=True)


def _cell_lstm_pallas(inputs_seq, w_xh, w_gates, c0):
    T, B, _ = inputs_seq.shape
    U = w_xh.shape[1]
    vmem = lambda: pl.BlockSpec(memory_space=pltpu.MemorySpace.VMEM)
    return pl.pallas_call(
        cell_lstm_seq_kernel,
        out_shape=(jax.ShapeDtypeStruct((T, B, U), jnp.float32),
                   jax.ShapeDtypeStruct((T, B, U), jnp.float32)),
        in_specs=[vmem(), vmem(), vmem(), vmem()],
        out_specs=(vmem(), vmem()),
    )(inputs_seq, w_xh, w_gates, c0)


def prepare_gate_weights(w_h_c, w_h_u, w_h_f, w_h_o):
    """One-time (parameter-prep) fusion into a lane-dense (U, 4U) matrix."""
    return jnp.concatenate([w_h_c, w_h_u, w_h_f, w_h_o], axis=1)


@jax.jit
def cell_lstm_sequence(inputs_seq, w_xh, w_gates, c_prev):
    """Run the cell over a (T, B, F) sequence; returns (c_seq, h_seq)."""
    _, B, _ = inputs_seq.shape
    U = w_xh.shape[1]
    c0 = jnp.broadcast_to(c_prev, (B, U)).astype(jnp.float32)
    return _cell_lstm_pallas(inputs_seq, w_xh, w_gates, c0)


@jax.jit
def cell_lstm_forward(inputs, w_xh, w_gates, c_prev):
    """Single-step forward matching the PyTorch module: returns (c_t, h)."""
    B, _ = inputs.shape
    U = w_xh.shape[1]
    c0 = jnp.broadcast_to(c_prev, (B, U)).astype(jnp.float32)
    c_seq, h_seq = _cell_lstm_pallas(inputs[None], w_xh, w_gates, c0)
    return c_seq[0], h_seq[0]


# ----------------------------- pure-JAX reference ---------------------------

def cell_lstm_step_reference(inputs, w_xh, w_h_c, w_h_u, w_h_f, w_h_o, c_prev):
    x = inputs @ w_xh
    c_tilda = jnp.tanh(x @ w_h_c)
    gamma_u = jax.nn.sigmoid(x @ w_h_u)
    gamma_f = jax.nn.sigmoid(x @ w_h_f)
    gamma_o = jax.nn.sigmoid(x @ w_h_o)
    c_t = gamma_u * c_tilda + gamma_f * c_prev
    h = gamma_o * jnp.tanh(c_t)
    return c_t, h


def cell_lstm_sequence_reference(inputs_seq, w_xh, w_h_c, w_h_u, w_h_f, w_h_o,
                                 c0):
    c = c0
    cs, hs = [], []
    for t in range(inputs_seq.shape[0]):
        c, h = cell_lstm_step_reference(inputs_seq[t], w_xh, w_h_c, w_h_u,
                                        w_h_f, w_h_o, c)
        cs.append(c)
        hs.append(h)
    return jnp.stack(cs), jnp.stack(hs)


if __name__ == "__main__":
    # Small shapes consistent with the module: seq=8, batch=2, in_features=4,
    # units=32.  (The NaN debug-print branch of the torch forward is a no-op on
    # the math and is not reproduced.)
    T, B, F, U = 8, 2, 4, 32

    key = jax.random.PRNGKey(0)
    k_in, k_xh, k_c, k_u, k_f, k_o = jax.random.split(key, 6)

    inputs_seq = jax.random.normal(k_in, (T, B, F), dtype=jnp.float32)
    # Parameters initialized like torch.rand: uniform [0, 1)
    w_xh  = jax.random.uniform(k_xh, (F, U), dtype=jnp.float32)
    w_h_c = jax.random.uniform(k_c,  (U, U), dtype=jnp.float32)
    w_h_u = jax.random.uniform(k_u,  (U, U), dtype=jnp.float32)
    w_h_f = jax.random.uniform(k_f,  (U, U), dtype=jnp.float32)
    w_h_o = jax.random.uniform(k_o,  (U, U), dtype=jnp.float32)
    # Initial hidden cell state (module __init__: zeros(1, units))
    c_prev = jnp.zeros((1, U), dtype=jnp.float32)

    # Hoisted one-time weight fusion (parameter prep, not per call).
    w_gates = prepare_gate_weights(w_h_c, w_h_u, w_h_f, w_h_o)
    w_gates = jax.block_until_ready(w_gates)

    # ---- sequence path (recurrence inside the kernel) ----
    c_seq, h_seq = cell_lstm_sequence(inputs_seq, w_xh, w_gates, c_prev)
    jax.block_until_ready((c_seq, h_seq))

    c_ref_seq, h_ref_seq = cell_lstm_sequence_reference(
        inputs_seq, w_xh, w_h_c, w_h_u, w_h_f, w_h_o, c_prev)
    assert jnp.allclose(c_seq, c_ref_seq, atol=1e-4, rtol=1e-4)
    assert jnp.allclose(h_seq, h_ref_seq, atol=1e-4, rtol=1e-4)

    # ---- single-step path (exact module forward semantics) ----
    c1, h1 = cell_lstm_forward(inputs_seq[0], w_xh, w_gates, c_prev)
    jax.block_until_ready((c1, h1))
    c1_ref, h1_ref = cell_lstm_step_reference(
        inputs_seq[0], w_xh, w_h_c, w_h_u, w_h_f, w_h_o, c_prev)
    assert jnp.allclose(c1, c1_ref, atol=1e-4, rtol=1e-4)
    assert jnp.allclose(h1, h1_ref, atol=1e-4, rtol=1e-4)

    print("KERNEL_OK")
</pallas_src>

<mosaic_0001>
module attributes {stable_mosaic.version = 11 : i64} {
  func.func @cell_lstm_seq_kernel(%arg0: memref<8x2x4xf32, #tpu.memory_space<vmem>>, %arg1: memref<4x32xf32, #tpu.memory_space<vmem>>, %arg2: memref<32x128xf32, #tpu.memory_space<vmem>>, %arg3: memref<2x32xf32, #tpu.memory_space<vmem>>, %arg4: memref<8x2x32xf32, #tpu.memory_space<vmem>>, %arg5: memref<8x2x32xf32, #tpu.memory_space<vmem>>) attributes {dimension_semantics = [], scalar_prefetch = 0 : i64, scratch_operands = 0 : i64, tpu.core_type = #tpu.core_type<tc>} {
    %c0 = arith.constant 0 : index
    %c0_0 = arith.constant 0 : index
    %0 = vector.load %arg1[%c0, %c0_0] : memref<4x32xf32, #tpu.memory_space<vmem>>, vector<4x32xf32>
    %c0_1 = arith.constant 0 : index
    %c0_2 = arith.constant 0 : index
    %1 = vector.load %arg2[%c0_1, %c0_2] : memref<32x128xf32, #tpu.memory_space<vmem>>, vector<32x128xf32>
    %c0_3 = arith.constant 0 : index
    %c0_4 = arith.constant 0 : index
    %2 = vector.load %arg3[%c0_3, %c0_4] : memref<2x32xf32, #tpu.memory_space<vmem>>, vector<2x32xf32>
    %c0_i32 = arith.constant 0 : i32
    %3 = arith.index_cast %c0_i32 : i32 to index
    %c0_5 = arith.constant 0 : index
    %c0_6 = arith.constant 0 : index
    %4 = vector.load %arg0[%3, %c0_5, %c0_6] : memref<8x2x4xf32, #tpu.memory_space<vmem>>, vector<1x2x4xf32>
    %5 = vector.shape_cast %4 : vector<1x2x4xf32> to vector<2x4xf32>
    %cst = arith.constant dense<0.000000e+00> : vector<2x32xf32>
    %6 = tpu.matmul %5, %0, %cst {dimension_numbers = #tpu.dot_dimension_numbers<[1], [0], [0], [1], [0, 0, 1, 1], [], []>} : vector<2x4xf32>, vector<4x32xf32>, vector<2x32xf32> -> vector<2x32xf32>
    %cst_7 = arith.constant dense<0.000000e+00> : vector<2x128xf32>
    %7 = tpu.matmul %6, %1, %cst_7 {dimension_numbers = #tpu.dot_dimension_numbers<[1], [0], [0], [1], [0, 0, 1, 1], [], []>} : vector<2x32xf32>, vector<32x128xf32>, vector<2x128xf32> -> vector<2x128xf32>
    %8 = vector.extract_strided_slice %7 {offsets = [0, 0], sizes = [2, 32], strides = [1, 1]} : vector<2x128xf32> to vector<2x32xf32>
    %9 = math.tanh %8 : vector<2x32xf32>
    %10 = vector.extract_strided_slice %7 {offsets = [0, 32], sizes = [2, 32], strides = [1, 1]} : vector<2x128xf32> to vector<2x32xf32>
    %11 = arith.negf %10 : vector<2x32xf32>
    %12 = math.exp %11 : vector<2x32xf32>
    %cst_8 = arith.constant 1.000000e+00 : f32
    %13 = vector.broadcast %cst_8 : f32 to vector<2x32xf32>
    %14 = arith.addf %13, %12 : vector<2x32xf32>
    %15 = arith.divf %13, %14 : vector<2x32xf32>
    %16 = vector.extract_strided_slice %7 {offsets = [0, 64], sizes = [2, 32], strides = [1, 1]} : vector<2x128xf32> to vector<2x32xf32>
    %17 = arith.negf %16 : vector<2x32xf32>
    %18 = math.exp %17 : vector<2x32xf32>
    %cst_9 = arith.constant 1.000000e+00 : f32
    %19 = vector.broadcast %cst_9 : f32 to vector<2x32xf32>
    %20 = arith.addf %19, %18 : vector<2x32xf32>
    %21 = arith.divf %19, %20 : vector<2x32xf32>
    %22 = vector.extract_strided_slice %7 {offsets = [0, 96], sizes = [2, 32], strides = [1, 1]} : vector<2x128xf32> to vector<2x32xf32>
    %23 = arith.negf %22 : vector<2x32xf32>
    %24 = math.exp %23 : vector<2x32xf32>
    %cst_10 = arith.constant 1.000000e+00 : f32
    %25 = vector.broadcast %cst_10 : f32 to vector<2x32xf32>
    %26 = arith.addf %25, %24 : vector<2x32xf32>
    %27 = arith.divf %25, %26 : vector<2x32xf32>
    %28 = arith.mulf %15, %9 : vector<2x32xf32>
    %29 = arith.mulf %21, %2 : vector<2x32xf32>
    %30 = arith.addf %28, %29 : vector<2x32xf32>
    %31 = math.tanh %30 : vector<2x32xf32>
    %32 = arith.mulf %27, %31 : vector<2x32xf32>
    %33 = arith.index_cast %c0_i32 : i32 to index
    %c0_11 = arith.constant 0 : index
    %c0_12 = arith.constant 0 : index
    %34 = vector.load %arg4[%33, %c0_11, %c0_12] : memref<8x2x32xf32, #tpu.memory_space<vmem>>, vector<1x2x32xf32>
    %35 = vector.shape_cast %34 : vector<1x2x32xf32> to vector<2x32xf32>
    %36 = vector.shape_cast %30 : vector<2x32xf32> to vector<1x2x32xf32>
    tpu.vector_store %arg4[%33, %c0_11, %c0_12], %36 {strides = array<i32>} : memref<8x2x32xf32, #tpu.memory_space<vmem>>, vector<1x2x32xf32>,
    %37 = arith.index_cast %c0_i32 : i32 to index
    %c0_13 = arith.constant 0 : index
    %c0_14 = arith.constant 0 : index
    %38 = vector.load %arg5[%37, %c0_13, %c0_14] : memref<8x2x32xf32, #tpu.memory_space<vmem>>, vector<1x2x32xf32>
    %39 = vector.shape_cast %38 : vector<1x2x32xf32> to vector<2x32xf32>
    %40 = vector.shape_cast %32 : vector<2x32xf32> to vector<1x2x32xf32>
    tpu.vector_store %arg5[%37, %c0_13, %c0_14], %40 {strides = array<i32>} : memref<8x2x32xf32, #tpu.memory_space<vmem>>, vector<1x2x32xf32>,
    %c1_i32 = arith.constant 1 : i32
    %41 = arith.index_cast %c1_i32 : i32 to index
    %c0_15 = arith.constant 0 : index
    %c0_16 = arith.constant 0 : index
    %42 = vector.load %arg0[%41, %c0_15, %c0_16] : memref<8x2x4xf32, #tpu.memory_space<vmem>>, vector<1x2x4xf32>
    %43 = vector.shape_cast %42 : vector<1x2x4xf32> to vector<2x4xf32>
    %cst_17 = arith.constant dense<0.000000e+00> : vector<2x32xf32>
    %44 = tpu.matmul %43, %0, %cst_17 {dimension_numbers = #tpu.dot_dimension_numbers<[1], [0], [0], [1], [0, 0, 1, 1], [], []>} : vector<2x4xf32>, vector<4x32xf32>, vector<2x32xf32> -> vector<2x32xf32>
    %cst_18 = arith.constant dense<0.000000e+00> : vector<2x128xf32>
    %45 = tpu.matmul %44, %1, %cst_18 {dimension_numbers = #tpu.dot_dimension_numbers<[1], [0], [0], [1], [0, 0, 1, 1], [], []>} : vector<2x32xf32>, vector<32x128xf32>, vector<2x128xf32> -> vector<2x128xf32>
    %46 = vector.extract_strided_slice %45 {offsets = [0, 0], sizes = [2, 32], strides = [1, 1]} : vector<2x128xf32> to vector<2x32xf32>
    %47 = math.tanh %46 : vector<2x32xf32>
    %48 = vector.extract_strided_slice %45 {offsets = [0, 32], sizes = [2, 32], strides = [1, 1]} : vector<2x128xf32> to vector<2x32xf32>
    %49 = arith.negf %48 : vector<2x32xf32>
    %50 = math.exp %49 : vector<2x32xf32>
    %cst_19 = arith.constant 1.000000e+00 : f32
    %51 = vector.broadcast %cst_19 : f32 to vector<2x32xf32>
    %52 = arith.addf %51, %50 : vector<2x32xf32>
    %53 = arith.divf %51, %52 : vector<2x32xf32>
    %54 = vector.extract_strided_slice %45 {offsets = [0, 64], sizes = [2, 32], strides = [1, 1]} : vector<2x128xf32> to vector<2x32xf32>
    %55 = arith.negf %54 : vector<2x32xf32>
    %56 = math.exp %55 : vector<2x32xf32>
    %cst_20 = arith.constant 1.000000e+00 : f32
    %57 = vector.broadcast %cst_20 : f32 to vector<2x32xf32>
    %58 = arith.addf %57, %56 : vector<2x32xf32>
    %59 = arith.divf %57, %58 : vector<2x32xf32>
    %60 = vector.extract_strided_slice %45 {offsets = [0, 96], sizes = [2, 32], strides = [1, 1]} : vector<2x128xf32> to vector<2x32xf32>
    %61 = arith.negf %60 : vector<2x32xf32>
    %62 = math.exp %61 : vector<2x32xf32>
    %cst_21 = arith.constant 1.000000e+00 : f32
    %63 = vector.broadcast %cst_21 : f32 to vector<2x32xf32>
    %64 = arith.addf %63, %62 : vector<2x32xf32>
    %65 = arith.divf %63, %64 : vector<2x32xf32>
    %66 = arith.mulf %53, %47 : vector<2x32xf32>
    %67 = arith.mulf %59, %30 : vector<2x32xf32>
    %68 = arith.addf %66, %67 : vector<2x32xf32>
    %69 = math.tanh %68 : vector<2x32xf32>
    %70 = arith.mulf %65, %69 : vector<2x32xf32>
    %71 = arith.index_cast %c1_i32 : i32 to index
    %c0_22 = arith.constant 0 : index
    %c0_23 = arith.constant 0 : index
    %72 = vector.load %arg4[%71, %c0_22, %c0_23] : memref<8x2x32xf32, #tpu.memory_space<vmem>>, vector<1x2x32xf32>
    %73 = vector.shape_cast %72 : vector<1x2x32xf32> to vector<2x32xf32>
    %74 = vector.shape_cast %68 : vector<2x32xf32> to vector<1x2x32xf32>
    tpu.vector_store %arg4[%71, %c0_22, %c0_23], %74 {strides = array<i32>} : memref<8x2x32xf32, #tpu.memory_space<vmem>>, vector<1x2x32xf32>,
    %75 = arith.index_cast %c1_i32 : i32 to index
    %c0_24 = arith.constant 0 : index
    %c0_25 = arith.constant 0 : index
    %76 = vector.load %arg5[%75, %c0_24, %c0_25] : memref<8x2x32xf32, #tpu.memory_space<vmem>>, vector<1x2x32xf32>
    %77 = vector.shape_cast %76 : vector<1x2x32xf32> to vector<2x32xf32>
    %78 = vector.shape_cast %70 : vector<2x32xf32> to vector<1x2x32xf32>
    tpu.vector_store %arg5[%75, %c0_24, %c0_25], %78 {strides = array<i32>} : memref<8x2x32xf32, #tpu.memory_space<vmem>>, vector<1x2x32xf32>,
    %c2_i32 = arith.constant 2 : i32
    %79 = arith.index_cast %c2_i32 : i32 to index
    %c0_26 = arith.constant 0 : index
    %c0_27 = arith.constant 0 : index
    %80 = vector.load %arg0[%79, %c0_26, %c0_27] : memref<8x2x4xf32, #tpu.memory_space<vmem>>, vector<1x2x4xf32>
    %81 = vector.shape_cast %80 : vector<1x2x4xf32> to vector<2x4xf32>
    %cst_28 = arith.constant dense<0.000000e+00> : vector<2x32xf32>
    %82 = tpu.matmul %81, %0, %cst_28 {dimension_numbers = #tpu.dot_dimension_numbers<[1], [0], [0], [1], [0, 0, 1, 1], [], []>} : vector<2x4xf32>, vector<4x32xf32>, vector<2x32xf32> -> vector<2x32xf32>
    %cst_29 = arith.constant dense<0.000000e+00> : vector<2x128xf32>
    %83 = tpu.matmul %82, %1, %cst_29 {dimension_numbers = #tpu.dot_dimension_numbers<[1], [0], [0], [1], [0, 0, 1, 1], [], []>} : vector<2x32xf32>, vector<32x128xf32>, vector<2x128xf32> -> vector<2x128xf32>
    %84 = vector.extract_strided_slice %83 {offsets = [0, 0], sizes = [2, 32], strides = [1, 1]} : vector<2x128xf32> to vector<2x32xf32>
    %85 = math.tanh %84 : vector<2x32xf32>
    %86 = vector.extract_strided_slice %83 {offsets = [0, 32], sizes = [2, 32], strides = [1, 1]} : vector<2x128xf32> to vector<2x32xf32>
    %87 = arith.negf %86 : vector<2x32xf32>
    %88 = math.exp %87 : vector<2x32xf32>
    %cst_30 = arith.constant 1.000000e+00 : f32
    %89 = vector.broadcast %cst_30 : f32 to vector<2x32xf32>
    %90 = arith.addf %89, %88 : vector<2x32xf32>
    %91 = arith.divf %89, %90 : vector<2x32xf32>
    %92 = vector.extract_strided_slice %83 {offsets = [0, 64], sizes = [2, 32], strides = [1, 1]} : vector<2x128xf32> to vector<2x32xf32>
    %93 = arith.negf %92 : vector<2x32xf32>
    %94 = math.exp %93 : vector<2x32xf32>
    %cst_31 = arith.constant 1.000000e+00 : f32
    %95 = vector.broadcast %cst_31 : f32 to vector<2x32xf32>
    %96 = arith.addf %95, %94 : vector<2x32xf32>
    %97 = arith.divf %95, %96 : vector<2x32xf32>
    %98 = vector.extract_strided_slice %83 {offsets = [0, 96], sizes = [2, 32], strides = [1, 1]} : vector<2x128xf32> to vector<2x32xf32>
    %99 = arith.negf %98 : vector<2x32xf32>
    %100 = math.exp %99 : vector<2x32xf32>
    %cst_32 = arith.constant 1.000000e+00 : f32
    %101 = vector.broadcast %cst_32 : f32 to vector<2x32xf32>
    %102 = arith.addf %101, %100 : vector<2x32xf32>
    %103 = arith.divf %101, %102 : vector<2x32xf32>
    %104 = arith.mulf %91, %85 : vector<2x32xf32>
    %105 = arith.mulf %97, %68 : vector<2x32xf32>
    %106 = arith.addf %104, %105 : vector<2x32xf32>
    %107 = math.tanh %106 : vector<2x32xf32>
    %108 = arith.mulf %103, %107 : vector<2x32xf32>
    %109 = arith.index_cast %c2_i32 : i32 to index
    %c0_33 = arith.constant 0 : index
    %c0_34 = arith.constant 0 : index
    %110 = vector.load %arg4[%109, %c0_33, %c0_34] : memref<8x2x32xf32, #tpu.memory_space<vmem>>, vector<1x2x32xf32>
    %111 = vector.shape_cast %110 : vector<1x2x32xf32> to vector<2x32xf32>
    %112 = vector.shape_cast %106 : vector<2x32xf32> to vector<1x2x32xf32>
    tpu.vector_store %arg4[%109, %c0_33, %c0_34], %112 {strides = array<i32>} : memref<8x2x32xf32, #tpu.memory_space<vmem>>, vector<1x2x32xf32>,
    %113 = arith.index_cast %c2_i32 : i32 to index
    %c0_35 = arith.constant 0 : index
    %c0_36 = arith.constant 0 : index
    %114 = vector.load %arg5[%113, %c0_35, %c0_36] : memref<8x2x32xf32, #tpu.memory_space<vmem>>, vector<1x2x32xf32>
    %115 = vector.shape_cast %114 : vector<1x2x32xf32> to vector<2x32xf32>
    %116 = vector.shape_cast %108 : vector<2x32xf32> to vector<1x2x32xf32>
    tpu.vector_store %arg5[%113, %c0_35, %c0_36], %116 {strides = array<i32>} : memref<8x2x32xf32, #tpu.memory_space<vmem>>, vector<1x2x32xf32>,
    %c3_i32 = arith.constant 3 : i32
    %117 = arith.index_cast %c3_i32 : i32 to index
    %c0_37 = arith.constant 0 : index
    %c0_38 = arith.constant 0 : index
    %118 = vector.load %arg0[%117, %c0_37, %c0_38] : memref<8x2x4xf32, #tpu.memory_space<vmem>>, vector<1x2x4xf32>
    %119 = vector.shape_cast %118 : vector<1x2x4xf32> to vector<2x4xf32>
    %cst_39 = arith.constant dense<0.000000e+00> : vector<2x32xf32>
    %120 = tpu.matmul %119, %0, %cst_39 {dimension_numbers = #tpu.dot_dimension_numbers<[1], [0], [0], [1], [0, 0, 1, 1], [], []>} : vector<2x4xf32>, vector<4x32xf32>, vector<2x32xf32> -> vector<2x32xf32>
    %cst_40 = arith.constant dense<0.000000e+00> : vector<2x128xf32>
    %121 = tpu.matmul %120, %1, %cst_40 {dimension_numbers = #tpu.dot_dimension_numbers<[1], [0], [0], [1], [0, 0, 1, 1], [], []>} : vector<2x32xf32>, vector<32x128xf32>, vector<2x128xf32> -> vector<2x128xf32>
    %122 = vector.extract_strided_slice %121 {offsets = [0, 0], sizes = [2, 32], strides = [1, 1]} : vector<2x128xf32> to vector<2x32xf32>
    %123 = math.tanh %122 : vector<2x32xf32>
    %124 = vector.extract_strided_slice %121 {offsets = [0, 32], sizes = [2, 32], strides = [1, 1]} : vector<2x128xf32> to vector<2x32xf32>
    %125 = arith.negf %124 : vector<2x32xf32>
    %126 = math.exp %125 : vector<2x32xf32>
    %cst_41 = arith.constant 1.000000e+00 : f32
    %127 = vector.broadcast %cst_41 : f32 to vector<2x32xf32>
    %128 = arith.addf %127, %126 : vector<2x32xf32>
    %129 = arith.divf %127, %128 : vector<2x32xf32>
    %130 = vector.extract_strided_slice %121 {offsets = [0, 64], sizes = [2, 32], strides = [1, 1]} : vector<2x128xf32> to vector<2x32xf32>
    %131 = arith.negf %130 : vector<2x32xf32>
    %132 = math.exp %131 : vector<2x32xf32>
    %cst_42 = arith.constant 1.000000e+00 : f32
    %133 = vector.broadcast %cst_42 : f32 to vector<2x32xf32>
    %134 = arith.addf %133, %132 : vector<2x32xf32>
    %135 = arith.divf %133, %134 : vector<2x32xf32>
    %136 = vector.extract_strided_slice %121 {offsets = [0, 96], sizes = [2, 32], strides = [1, 1]} : vector<2x128xf32> to vector<2x32xf32>
    %137 = arith.negf %136 : vector<2x32xf32>
    %138 = math.exp %137 : vector<2x32xf32>
    %cst_43 = arith.constant 1.000000e+00 : f32
    %139 = vector.broadcast %cst_43 : f32 to vector<2x32xf32>
    %140 = arith.addf %139, %138 : vector<2x32xf32>
    %141 = arith.divf %139, %140 : vector<2x32xf32>
    %142 = arith.mulf %129, %123 : vector<2x32xf32>
    %143 = arith.mulf %135, %106 : vector<2x32xf32>
    %144 = arith.addf %142, %143 : vector<2x32xf32>
    %145 = math.tanh %144 : vector<2x32xf32>
    %146 = arith.mulf %141, %145 : vector<2x32xf32>
    %147 = arith.index_cast %c3_i32 : i32 to index
    %c0_44 = arith.constant 0 : index
    %c0_45 = arith.constant 0 : index
    %148 = vector.load %arg4[%147, %c0_44, %c0_45] : memref<8x2x32xf32, #tpu.memory_space<vmem>>, vector<1x2x32xf32>
    %149 = vector.shape_cast %148 : vector<1x2x32xf32> to vector<2x32xf32>
    %150 = vector.shape_cast %144 : vector<2x32xf32> to vector<1x2x32xf32>
    tpu.vector_store %arg4[%147, %c0_44, %c0_45], %150 {strides = array<i32>} : memref<8x2x32xf32, #tpu.memory_space<vmem>>, vector<1x2x32xf32>,
    %151 = arith.index_cast %c3_i32 : i32 to index
    %c0_46 = arith.constant 0 : index
    %c0_47 = arith.constant 0 : index
    %152 = vector.load %arg5[%151, %c0_46, %c0_47] : memref<8x2x32xf32, #tpu.memory_space<vmem>>, vector<1x2x32xf32>
    %153 = vector.shape_cast %152 : vector<1x2x32xf32> to vector<2x32xf32>
    %154 = vector.shape_cast %146 : vector<2x32xf32> to vector<1x2x32xf32>
    tpu.vector_store %arg5[%151, %c0_46, %c0_47], %154 {strides = array<i32>} : memref<8x2x32xf32, #tpu.memory_space<vmem>>, vector<1x2x32xf32>,
    %c4_i32 = arith.constant 4 : i32
    %155 = arith.index_cast %c4_i32 : i32 to index
    %c0_48 = arith.constant 0 : index
    %c0_49 = arith.constant 0 : index
    %156 = vector.load %arg0[%155, %c0_48, %c0_49] : memref<8x2x4xf32, #tpu.memory_space<vmem>>, vector<1x2x4xf32>
    %157 = vector.shape_cast %156 : vector<1x2x4xf32> to vector<2x4xf32>
    %cst_50 = arith.constant dense<0.000000e+00> : vector<2x32xf32>
    %158 = tpu.matmul %157, %0, %cst_50 {dimension_numbers = #tpu.dot_dimension_numbers<[1], [0], [0], [1], [0, 0, 1, 1], [], []>} : vector<2x4xf32>, vector<4x32xf32>, vector<2x32xf32> -> vector<2x32xf32>
    %cst_51 = arith.constant dense<0.000000e+00> : vector<2x128xf32>
    %159 = tpu.matmul %158, %1, %cst_51 {dimension_numbers = #tpu.dot_dimension_numbers<[1], [0], [0], [1], [0, 0, 1, 1], [], []>} : vector<2x32xf32>, vector<32x128xf32>, vector<2x128xf32> -> vector<2x128xf32>
    %160 = vector.extract_strided_slice %159 {offsets = [0, 0], sizes = [2, 32], strides = [1, 1]} : vector<2x128xf32> to vector<2x32xf32>
    %161 = math.tanh %160 : vector<2x32xf32>
    %162 = vector.extract_strided_slice %159 {offsets = [0, 32], sizes = [2, 32], strides = [1, 1]} : vector<2x128xf32> to vector<2x32xf32>
    %163 = arith.negf %162 : vector<2x32xf32>
    %164 = math.exp %163 : vector<2x32xf32>
    %cst_52 = arith.constant 1.000000e+00 : f32
    %165 = vector.broadcast %cst_52 : f32 to vector<2x32xf32>
    %166 = arith.addf %165, %164 : vector<2x32xf32>
    %167 = arith.divf %165, %166 : vector<2x32xf32>
    %168 = vector.extract_strided_slice %159 {offsets = [0, 64], sizes = [2, 32], strides = [1, 1]} : vector<2x128xf32> to vector<2x32xf32>
    %169 = arith.negf %168 : vector<2x32xf32>
    %170 = math.exp %169 : vector<2x32xf32>
    %cst_53 = arith.constant 1.000000e+00 : f32
    %171 = vector.broadcast %cst_53 : f32 to vector<2x32xf32>
    %172 = arith.addf %171, %170 : vector<2x32xf32>
    %173 = arith.divf %171, %172 : vector<2x32xf32>
    %174 = vector.extract_strided_slice %159 {offsets = [0, 96], sizes = [2, 32], strides = [1, 1]} : vector<2x128xf32> to vector<2x32xf32>
    %175 = arith.negf %174 : vector<2x32xf32>
    %176 = math.exp %175 : vector<2x32xf32>
    %cst_54 = arith.constant 1.000000e+00 : f32
    %177 = vector.broadcast %cst_54 : f32 to vector<2x32xf32>
    %178 = arith.addf %177, %176 : vector<2x32xf32>
    %179 = arith.divf %177, %178 : vector<2x32xf32>
    %180 = arith.mulf %167, %161 : vector<2x32xf32>
    %181 = arith.mulf %173, %144 : vector<2x32xf32>
    %182 = arith.addf %180, %181 : vector<2x32xf32>
    %183 = math.tanh %182 : vector<2x32xf32>
    %184 = arith.mulf %179, %183 : vector<2x32xf32>
    %185 = arith.index_cast %c4_i32 : i32 to index
    %c0_55 = arith.constant 0 : index
    %c0_56 = arith.constant 0 : index
    %186 = vector.load %arg4[%185, %c0_55, %c0_56] : memref<8x2x32xf32, #tpu.memory_space<vmem>>, vector<1x2x32xf32>
    %187 = vector.shape_cast %186 : vector<1x2x32xf32> to vector<2x32xf32>
    %188 = vector.shape_cast %182 : vector<2x32xf32> to vector<1x2x32xf32>
    tpu.vector_store %arg4[%185, %c0_55, %c0_56], %188 {strides = array<i32>} : memref<8x2x32xf32, #tpu.memory_space<vmem>>, vector<1x2x32xf32>,
    %189 = arith.index_cast %c4_i32 : i32 to index
    %c0_57 = arith.constant 0 : index
    %c0_58 = arith.constant 0 : index
    %190 = vector.load %arg5[%189, %c0_57, %c0_58] : memref<8x2x32xf32, #tpu.memory_space<vmem>>, vector<1x2x32xf32>
    %191 = vector.shape_cast %190 : vector<1x2x32xf32> to vector<2x32xf32>
    %192 = vector.shape_cast %184 : vector<2x32xf32> to vector<1x2x32xf32>
    tpu.vector_store %arg5[%189, %c0_57, %c0_58], %192 {strides = array<i32>} : memref<8x2x32xf32, #tpu.memory_space<vmem>>, vector<1x2x32xf32>,
    %c5_i32 = arith.constant 5 : i32
    %193 = arith.index_cast %c5_i32 : i32 to index
    %c0_59 = arith.constant 0 : index
    %c0_60 = arith.constant 0 : index
    %194 = vector.load %arg0[%193, %c0_59, %c0_60] : memref<8x2x4xf32, #tpu.memory_space<vmem>>, vector<1x2x4xf32>
    %195 = vector.shape_cast %194 : vector<1x2x4xf32> to vector<2x4xf32>
    %cst_61 = arith.constant dense<0.000000e+00> : vector<2x32xf32>
    %196 = tpu.matmul %195, %0, %cst_61 {dimension_numbers = #tpu.dot_dimension_numbers<[1], [0], [0], [1], [0, 0, 1, 1], [], []>} : vector<2x4xf32>, vector<4x32xf32>, vector<2x32xf32> -> vector<2x32xf32>
    %cst_62 = arith.constant dense<0.000000e+00> : vector<2x128xf32>
    %197 = tpu.matmul %196, %1, %cst_62 {dimension_numbers = #tpu.dot_dimension_numbers<[1], [0], [0], [1], [0, 0, 1, 1], [], []>} : vector<2x32xf32>, vector<32x128xf32>, vector<2x128xf32> -> vector<2x128xf32>
    %198 = vector.extract_strided_slice %197 {offsets = [0, 0], sizes = [2, 32], strides = [1, 1]} : vector<2x128xf32> to vector<2x32xf32>
    %199 = math.tanh %198 : vector<2x32xf32>
    %200 = vector.extract_strided_slice %197 {offsets = [0, 32], sizes = [2, 32], strides = [1, 1]} : vector<2x128xf32> to vector<2x32xf32>
    %201 = arith.negf %200 : vector<2x32xf32>
    %202 = math.exp %201 : vector<2x32xf32>
    %cst_63 = arith.constant 1.000000e+00 : f32
    %203 = vector.broadcast %cst_63 : f32 to vector<2x32xf32>
    %204 = arith.addf %203, %202 : vector<2x32xf32>
    %205 = arith.divf %203, %204 : vector<2x32xf32>
    %206 = vector.extract_strided_slice %197 {offsets = [0, 64], sizes = [2, 32], strides = [1, 1]} : vector<2x128xf32> to vector<2x32xf32>
    %207 = arith.negf %206 : vector<2x32xf32>
    %208 = math.exp %207 : vector<2x32xf32>
    %cst_64 = arith.constant 1.000000e+00 : f32
    %209 = vector.broadcast %cst_64 : f32 to vector<2x32xf32>
    %210 = arith.addf %209, %208 : vector<2x32xf32>
    %211 = arith.divf %209, %210 : vector<2x32xf32>
    %212 = vector.extract_strided_slice %197 {offsets = [0, 96], sizes = [2, 32], strides = [1, 1]} : vector<2x128xf32> to vector<2x32xf32>
    %213 = arith.negf %212 : vector<2x32xf32>
    %214 = math.exp %213 : vector<2x32xf32>
    %cst_65 = arith.constant 1.000000e+00 : f32
    %215 = vector.broadcast %cst_65 : f32 to vector<2x32xf32>
    %216 = arith.addf %215, %214 : vector<2x32xf32>
    %217 = arith.divf %215, %216 : vector<2x32xf32>
    %218 = arith.mulf %205, %199 : vector<2x32xf32>
    %219 = arith.mulf %211, %182 : vector<2x32xf32>
    %220 = arith.addf %218, %219 : vector<2x32xf32>
    %221 = math.tanh %220 : vector<2x32xf32>
    %222 = arith.mulf %217, %221 : vector<2x32xf32>
    %223 = arith.index_cast %c5_i32 : i32 to index
    %c0_66 = arith.constant 0 : index
    %c0_67 = arith.constant 0 : index
    %224 = vector.load %arg4[%223, %c0_66, %c0_67] : memref<8x2x32xf32, #tpu.memory_space<vmem>>, vector<1x2x32xf32>
    %225 = vector.shape_cast %224 : vector<1x2x32xf32> to vector<2x32xf32>
    %226 = vector.shape_cast %220 : vector<2x32xf32> to vector<1x2x32xf32>
    tpu.vector_store %arg4[%223, %c0_66, %c0_67], %226 {strides = array<i32>} : memref<8x2x32xf32, #tpu.memory_space<vmem>>, vector<1x2x32xf32>,
    %227 = arith.index_cast %c5_i32 : i32 to index
    %c0_68 = arith.constant 0 : index
    %c0_69 = arith.constant 0 : index
    %228 = vector.load %arg5[%227, %c0_68, %c0_69] : memref<8x2x32xf32, #tpu.memory_space<vmem>>, vector<1x2x32xf32>
    %229 = vector.shape_cast %228 : vector<1x2x32xf32> to vector<2x32xf32>
    %230 = vector.shape_cast %222 : vector<2x32xf32> to vector<1x2x32xf32>
    tpu.vector_store %arg5[%227, %c0_68, %c0_69], %230 {strides = array<i32>} : memref<8x2x32xf32, #tpu.memory_space<vmem>>, vector<1x2x32xf32>,
    %c6_i32 = arith.constant 6 : i32
    %231 = arith.index_cast %c6_i32 : i32 to index
    %c0_70 = arith.constant 0 : index
    %c0_71 = arith.constant 0 : index
    %232 = vector.load %arg0[%231, %c0_70, %c0_71] : memref<8x2x4xf32, #tpu.memory_space<vmem>>, vector<1x2x4xf32>
    %233 = vector.shape_cast %232 : vector<1x2x4xf32> to vector<2x4xf32>
    %cst_72 = arith.constant dense<0.000000e+00> : vector<2x32xf32>
    %234 = tpu.matmul %233, %0, %cst_72 {dimension_numbers = #tpu.dot_dimension_numbers<[1], [0], [0], [1], [0, 0, 1, 1], [], []>} : vector<2x4xf32>, vector<4x32xf32>, vector<2x32xf32> -> vector<2x32xf32>
    %cst_73 = arith.constant dense<0.000000e+00> : vector<2x128xf32>
    %235 = tpu.matmul %234, %1, %cst_73 {dimension_numbers = #tpu.dot_dimension_numbers<[1], [0], [0], [1], [0, 0, 1, 1], [], []>} : vector<2x32xf32>, vector<32x128xf32>, vector<2x128xf32> -> vector<2x128xf32>
    %236 = vector.extract_strided_slice %235 {offsets = [0, 0], sizes = [2, 32], strides = [1, 1]} : vector<2x128xf32> to vector<2x32xf32>
    %237 = math.tanh %236 : vector<2x32xf32>
    %238 = vector.extract_strided_slice %235 {offsets = [0, 32], sizes = [2, 32], strides = [1, 1]} : vector<2x128xf32> to vector<2x32xf32>
    %239 = arith.negf %238 : vector<2x32xf32>
    %240 = math.exp %239 : vector<2x32xf32>
    %cst_74 = arith.constant 1.000000e+00 : f32
    %241 = vector.broadcast %cst_74 : f32 to vector<2x32xf32>
    %242 = arith.addf %241, %240 : vector<2x32xf32>
    %243 = arith.divf %241, %242 : vector<2x32xf32>
    %244 = vector.extract_strided_slice %235 {offsets = [0, 64], sizes = [2, 32], strides = [1, 1]} : vector<2x128xf32> to vector<2x32xf32>
    %245 = arith.negf %244 : vector<2x32xf32>
    %246 = math.exp %245 : vector<2x32xf32>
    %cst_75 = arith.constant 1.000000e+00 : f32
    %247 = vector.broadcast %cst_75 : f32 to vector<2x32xf32>
    %248 = arith.addf %247, %246 : vector<2x32xf32>
    %249 = arith.divf %247, %248 : vector<2x32xf32>
    %250 = vector.extract_strided_slice %235 {offsets = [0, 96], sizes = [2, 32], strides = [1, 1]} : vector<2x128xf32> to vector<2x32xf32>
    %251 = arith.negf %250 : vector<2x32xf32>
    %252 = math.exp %251 : vector<2x32xf32>
    %cst_76 = arith.constant 1.000000e+00 : f32
    %253 = vector.broadcast %cst_76 : f32 to vector<2x32xf32>
    %254 = arith.addf %253, %252 : vector<2x32xf32>
    %255 = arith.divf %253, %254 : vector<2x32xf32>
    %256 = arith.mulf %243, %237 : vector<2x32xf32>
    %257 = arith.mulf %249, %220 : vector<2x32xf32>
    %258 = arith.addf %256, %257 : vector<2x32xf32>
    %259 = math.tanh %258 : vector<2x32xf32>
    %260 = arith.mulf %255, %259 : vector<2x32xf32>
    %261 = arith.index_cast %c6_i32 : i32 to index
    %c0_77 = arith.constant 0 : index
    %c0_78 = arith.constant 0 : index
    %262 = vector.load %arg4[%261, %c0_77, %c0_78] : memref<8x2x32xf32, #tpu.memory_space<vmem>>, vector<1x2x32xf32>
    %263 = vector.shape_cast %262 : vector<1x2x32xf32> to vector<2x32xf32>
    %264 = vector.shape_cast %258 : vector<2x32xf32> to vector<1x2x32xf32>
    tpu.vector_store %arg4[%261, %c0_77, %c0_78], %264 {strides = array<i32>} : memref<8x2x32xf32, #tpu.memory_space<vmem>>, vector<1x2x32xf32>,
    %265 = arith.index_cast %c6_i32 : i32 to index
    %c0_79 = arith.constant 0 : index
    %c0_80 = arith.constant 0 : index
    %266 = vector.load %arg5[%265, %c0_79, %c0_80] : memref<8x2x32xf32, #tpu.memory_space<vmem>>, vector<1x2x32xf32>
    %267 = vector.shape_cast %266 : vector<1x2x32xf32> to vector<2x32xf32>
    %268 = vector.shape_cast %260 : vector<2x32xf32> to vector<1x2x32xf32>
    tpu.vector_store %arg5[%265, %c0_79, %c0_80], %268 {strides = array<i32>} : memref<8x2x32xf32, #tpu.memory_space<vmem>>, vector<1x2x32xf32>,
    %c7_i32 = arith.constant 7 : i32
    %269 = arith.index_cast %c7_i32 : i32 to index
    %c0_81 = arith.constant 0 : index
    %c0_82 = arith.constant 0 : index
    %270 = vector.load %arg0[%269, %c0_81, %c0_82] : memref<8x2x4xf32, #tpu.memory_space<vmem>>, vector<1x2x4xf32>
    %271 = vector.shape_cast %270 : vector<1x2x4xf32> to vector<2x4xf32>
    %cst_83 = arith.constant dense<0.000000e+00> : vector<2x32xf32>
    %272 = tpu.matmul %271, %0, %cst_83 {dimension_numbers = #tpu.dot_dimension_numbers<[1], [0], [0], [1], [0, 0, 1, 1], [], []>} : vector<2x4xf32>, vector<4x32xf32>, vector<2x32xf32> -> vector<2x32xf32>
    %cst_84 = arith.constant dense<0.000000e+00> : vector<2x128xf32>
    %273 = tpu.matmul %272, %1, %cst_84 {dimension_numbers = #tpu.dot_dimension_numbers<[1], [0], [0], [1], [0, 0, 1, 1], [], []>} : vector<2x32xf32>, vector<32x128xf32>, vector<2x128xf32> -> vector<2x128xf32>
    %274 = vector.extract_strided_slice %273 {offsets = [0, 0], sizes = [2, 32], strides = [1, 1]} : vector<2x128xf32> to vector<2x32xf32>
    %275 = math.tanh %274 : vector<2x32xf32>
    %276 = vector.extract_strided_slice %273 {offsets = [0, 32], sizes = [2, 32], strides = [1, 1]} : vector<2x128xf32> to vector<2x32xf32>
    %277 = arith.negf %276 : vector<2x32xf32>
    %278 = math.exp %277 : vector<2x32xf32>
    %cst_85 = arith.constant 1.000000e+00 : f32
    %279 = vector.broadcast %cst_85 : f32 to vector<2x32xf32>
    %280 = arith.addf %279, %278 : vector<2x32xf32>
    %281 = arith.divf %279, %280 : vector<2x32xf32>
    %282 = vector.extract_strided_slice %273 {offsets = [0, 64], sizes = [2, 32], strides = [1, 1]} : vector<2x128xf32> to vector<2x32xf32>
    %283 = arith.negf %282 : vector<2x32xf32>
    %284 = math.exp %283 : vector<2x32xf32>
    %cst_86 = arith.constant 1.000000e+00 : f32
    %285 = vector.broadcast %cst_86 : f32 to vector<2x32xf32>
    %286 = arith.addf %285, %284 : vector<2x32xf32>
    %287 = arith.divf %285, %286 : vector<2x32xf32>
    %288 = vector.extract_strided_slice %273 {offsets = [0, 96], sizes = [2, 32], strides = [1, 1]} : vector<2x128xf32> to vector<2x32xf32>
    %289 = arith.negf %288 : vector<2x32xf32>
    %290 = math.exp %289 : vector<2x32xf32>
    %cst_87 = arith.constant 1.000000e+00 : f32
    %291 = vector.broadcast %cst_87 : f32 to vector<2x32xf32>
    %292 = arith.addf %291, %290 : vector<2x32xf32>
    %293 = arith.divf %291, %292 : vector<2x32xf32>
    %294 = arith.mulf %281, %275 : vector<2x32xf32>
    %295 = arith.mulf %287, %258 : vector<2x32xf32>
    %296 = arith.addf %294, %295 : vector<2x32xf32>
    %297 = math.tanh %296 : vector<2x32xf32>
    %298 = arith.mulf %293, %297 : vector<2x32xf32>
    %299 = arith.index_cast %c7_i32 : i32 to index
    %c0_88 = arith.constant 0 : index
    %c0_89 = arith.constant 0 : index
    %300 = vector.load %arg4[%299, %c0_88, %c0_89] : memref<8x2x32xf32, #tpu.memory_space<vmem>>, vector<1x2x32xf32>
    %301 = vector.shape_cast %300 : vector<1x2x32xf32> to vector<2x32xf32>
    %302 = vector.shape_cast %296 : vector<2x32xf32> to vector<1x2x32xf32>
    tpu.vector_store %arg4[%299, %c0_88, %c0_89], %302 {strides = array<i32>} : memref<8x2x32xf32, #tpu.memory_space<vmem>>, vector<1x2x32xf32>,
    %303 = arith.index_cast %c7_i32 : i32 to index
    %c0_90 = arith.constant 0 : index
    %c0_91 = arith.constant 0 : index
    %304 = vector.load %arg5[%303, %c0_90, %c0_91] : memref<8x2x32xf32, #tpu.memory_space<vmem>>, vector<1x2x32xf32>
    %305 = vector.shape_cast %304 : vector<1x2x32xf32> to vector<2x32xf32>
    %306 = vector.shape_cast %298 : vector<2x32xf32> to vector<1x2x32xf32>
    tpu.vector_store %arg5[%303, %c0_90, %c0_91], %306 {strides = array<i32>} : memref<8x2x32xf32, #tpu.memory_space<vmem>>, vector<1x2x32xf32>,
    %c8_i32 = arith.constant 8 : i32
    return
  }
}

</mosaic_0001>

<bundles_post_ra>
// kernel: cell_lstm_sequence.1
= control target key start
LH: loop header
LB: loop body
LE: loop exit
PB: predicated region body
PF: predicated region fallthrough
CT: control target
= control target key end

     0   :  { %11 = vsyncpa [#allocation3], 0  ;;  %s1366_s0 = inlined_call_operand.vmem [shape: f32[8,2,4], index: 0, kind: input, shape index: {}]   ;;  %s1367_s1 = inlined_call_operand.vmem [shape: f32[4,32], index: 1, kind: input, shape index: {}]   ;;  %s1368_s2 = inlined_call_operand.hbm [shape: f32[32,128], index: 2, kind: input, shape index: {}]   ;;  %s1369_s3 = inlined_call_operand.vmem [shape: f32[2,32], index: 3, kind: input, shape index: {}]   ;;  %s1370_s4 = inlined_call_operand.hbm [shape: f32[8,2,32], index: 4, kind: output, shape index: {0}]   ;;  %s1371_s5 = inlined_call_operand.hbm [shape: f32[8,2,32], index: 5, kind: output, shape index: {1}]  }
   0x1   :  { %12 = vsyncpa [#allocation4], 0 }
   0x2   :  { %13 = vsyncpa [#allocation7], 0  ;;  %s22_s20 = sshll.u32 %s1368_s2, 4  ;;  %s1075_s21 = smov [#allocation2]   ;;  %s23_s20 = int_to_ptr.hbm [resolvable:$true] %s22_s20 }
   0x3   :  { %s24_s22 = sshll.u32 %s1075_s21, 4  ;;  %s1076_s23 = smov 128   ;;  %s25_s22 = int_to_ptr.vmem [resolvable:$true] %s24_s22 }
   0x4   :  { %s1077_s24 = smov 8  }
   0x5   :  { %30 = dma.hbm_to_vmem [thread:$0]  %s23_s20, 512, %s25_s22, [#allocation3], %s1076_s23, %s1076_s23, %s1077_s24  }
   0x6   :  { %1069 = dma.done.wait [#allocation3], 512  }
   0x7   :  { %1070 = vsyncadd [#allocation3], 4294966784  ;;  %vm48_vm0 = vcmask 1043456   ;;  %vm44_vm1 = vcmask 31744   ;;  %v37_v0 = vld [vmem:[%s1367_s1] sm:$0xf] }
   0x8   :  { %v43_v1 = vld [vmem:[%s1366_s0] sm:$0x3]  ;;  %v1123_v2 = vld [vmem:[#allocation2 + $0x18] sm:$0xff]  ;;  %885 = vmatpush.msk.msra.mxu0 %vm48_vm0, %v37_v0  ;;  %v1127_v3 = vld [vmem:[#allocation2 + $0x10] sm:$0xff]  ;;  %890 = vmatpush.msk.msra.mxu2 %vm48_vm0, %v37_v0  ;;  %s1078_s6 = smov 64   ;;  %vm72_vm2 = vcmask 261120  }
   0x9   :  { %88 = vmatpush.msra.mxu1 %v1123_v2  ;;  %886 = vmatmul.msk.f32.vlgmr.msra.gmra.mxu0 %vm44_vm1, %v43_v1  ;;  %v1130_v4 = vld [vmem:[#allocation2 + $0x8] sm:$0xff]  ;;  %v1143_v5 = vld [vmem:[#allocation2] sm:$0xff]  ;;  %s1079_s14 = smov 32   ;;  %s1081_s19 = smov [#allocation5]  }
   0xa   :  { %188 = vmatpush.msra.mxu3 %v1123_v2  ;;  %895 = vmatpush.msk.msrb.mxu0 %vm48_vm0, %v37_v0  ;;  %v889_v6 = vld [vmem:[%s1366_s0 + $0x2] sm:$0x3]  ;;  %v42_v7 = vld [vmem:[%s1369_s3] sm:$0x3]  ;;  %v894_v10 = vld [vmem:[%s1366_s0 + $0x4] sm:$0x3] }
   0xb   :  { %89 = vmatpush.msra.mxu1 %v1127_v3  ;;  %288 = vmatpush.msrb.mxu2 %v1123_v2  ;;  %v899_v11 = vld [vmem:[%s1366_s0 + $0x6] sm:$0x3]  ;;  %v904_v14 = vld [vmem:[%s1366_s0 + $0x8] sm:$0x3]  ;;  %v909_v15 = vld [vmem:[%s1366_s0 + $0xa] sm:$0x3] }
   0xc   :  { %189 = vmatpush.msra.mxu3 %v1127_v3  ;;  %905 = vmatpush.msk.msra.mxu0 %vm48_vm0, %v37_v0  ;;  %v914_v19 = vld [vmem:[%s1366_s0 + $0xc] sm:$0x3]  ;;  %v919_v20 = vld [vmem:[%s1366_s0 + $0xe] sm:$0x3]  ;;  %s1080_s0 = smov 96   ;;  %s852_s20 = sshll.u32 %s1081_s19, 4  ;;  %s853_s20 = int_to_ptr.vmem [resolvable:$true] %s852_s20 }
   0xd   :  { %90 = vmatpush.msra.mxu1 %v1130_v4  ;;  %289 = vmatpush.msrb.mxu2 %v1127_v3  ;;  %s854_s23 = sshll.u32 %s1370_s4, 4  ;;  %s1082_s24 = smov 2   ;;  %s855_s23 = int_to_ptr.hbm [resolvable:$true] %s854_s23 }
   0xe   :  { %190 = vmatpush.msra.mxu3 %v1130_v4  ;;  %891 = vmatmul.msk.f32.vlgmr.msra.gmra.mxu2 %vm44_vm1, %v889_v6  ;;  %s1083_s25 = smov [#allocation6]   ;;  %s867_s1 = sshll.u32 %s1371_s5, 4  ;;  %s868_s1 = int_to_ptr.hbm [resolvable:$true] %s867_s1 }
   0xf   :  { %290 = vmatpush.msrb.mxu2 %v1130_v4  ;;  %91 = vmatpush.msra.mxu1 %v1143_v5  ;;  %s865_s26 = sshll.u32 %s1083_s25, 4  ;;  %s866_s26 = int_to_ptr.vmem [resolvable:$true] %s865_s26 }
  0x10   :  { %191 = vmatpush.msra.mxu3 %v1143_v5  ;;  %122 = vrot.lane.b32.xlu0 %v42_v7, %s1078_s6 }
  0x11   :  { %900 = vmatpush.msk.msrb.mxu1 %vm48_vm0, %v37_v0  ;;  %291 = vmatpush.msrb.mxu2 %v1143_v5 }
  0x12   :  { %388 = vmatpush.msrb.mxu3 %v1123_v2  ;;  %896 = vmatmul.msk.f32.vlgmr.msrb.gmra.mxu0 %vm44_vm1, %v894_v10 }
  0x13   :  { %488 = vmatpush.msra.mxu2 %v1123_v2  ;;  %915 = vmatpush.msk.msrb.mxu0 %vm48_vm0, %v37_v0 }
  0x14   :  { %389 = vmatpush.msrb.mxu3 %v1127_v3 }
  0x15   :  { %489 = vmatpush.msra.mxu2 %v1127_v3 }
  0x16   :  { %390 = vmatpush.msrb.mxu3 %v1130_v4 }
  0x17   :  { %490 = vmatpush.msra.mxu2 %v1130_v4 }
  0x18   :  { %391 = vmatpush.msrb.mxu3 %v1143_v5 }
  0x19   :  { %491 = vmatpush.msra.mxu2 %v1143_v5 }
  0x1a   :  { %906 = vmatmul.msk.f32.vlgmr.msra.gmra.mxu0 %vm44_vm1, %v904_v14 }
  0x22   :  { %916 = vmatmul.msk.f32.vlgmr.msrb.gmra.mxu0 %vm44_vm1, %v914_v19 }
  0x82   :  { %v123_v28 = vpop.permute.xlu0 %122 }
  0x86   :  { %v69_v8 = vpop.f32.mrf.mxu0 }
  0x87   :  { %887 = vmatmul.msk.f32.vlgmr.msra.gmra.mxu1 %vm72_vm2, %v69_v8 }
  0x88   :  { %910 = vmatpush.msk.msra.mxu1 %vm48_vm0, %v37_v0 }
  0x8f   :  { %901 = vmatmul.msk.f32.vlgmr.msrb.gmra.mxu1 %vm44_vm1, %v899_v11  ;;  %v270_v35 = vpop.f32.mrf.mxu0 }
  0x90   :  { %920 = vmatpush.msk.msrb.mxu1 %vm48_vm0, %v37_v0  ;;  %897 = vmatmul.msk.f32.vlgmr.msrb.gmra.mxu2 %vm72_vm2, %v270_v35 }
  0x91   :  { %v170_v9 = vpop.f32.mrf.mxu2  ;;  %688 = vmatpush.msrb.mxu2 %v1123_v2 }
  0x92   :  { %892 = vmatmul.msk.f32.vlgmr.msra.gmra.mxu3 %vm72_vm2, %v170_v9 }
  0x93   :  { %588 = vmatpush.msra.mxu3 %v1123_v2  ;;  %689 = vmatpush.msrb.mxu2 %v1127_v3 }
  0x95   :  { %589 = vmatpush.msra.mxu3 %v1127_v3  ;;  %690 = vmatpush.msrb.mxu2 %v1130_v4 }
  0x97   :  { %590 = vmatpush.msra.mxu3 %v1130_v4  ;;  %911 = vmatmul.msk.f32.vlgmr.msra.gmra.mxu1 %vm44_vm1, %v909_v15  ;;  %v470_v37 = vpop.f32.mrf.mxu0 }
  0x98   :  { %691 = vmatpush.msrb.mxu2 %v1143_v5 }
  0x99   :  { %591 = vmatpush.msra.mxu3 %v1143_v5  ;;  %907 = vmatmul.msk.f32.vlgmr.msra.gmra.mxu2 %vm72_vm2, %v470_v37 }
  0x9f   :  { %921 = vmatmul.msk.f32.vlgmr.msrb.gmra.mxu1 %vm44_vm1, %v919_v20  ;;  %v670_v40 = vpop.f32.mrf.mxu0 }
  0xa1   :  { %917 = vmatmul.msk.f32.vlgmr.msrb.gmra.mxu2 %vm72_vm2, %v670_v40 }
 0x104   :  { %v93_v12 = vpop.f32.mrf.mxu1 }
 0x105   :  { %933 = vtanh.f32 %v93_v12  ;;  %v888_v13 = vmul.f32 -1.442695, %v93_v12 }
 0x107   :  { %935 = vpow2.f32 %v888_v13 }
 0x10b   :  { %v934_v16 = vpop.eup %933 }
 0x10c   :  { %117 = vrot.lane.b32.xlu0 %v934_v16, %s1079_s14  ;;  %v370_v36 = vpop.f32.mrf.mxu1 }
 0x10d   :  { %v936_v17 = vpop.eup %935  ;;  %902 = vmatmul.msk.f32.vlgmr.msrb.gmra.mxu3 %vm72_vm2, %v370_v36 }
 0x10e   :  { %v100_v18 = vadd.f32 1.0, %v936_v17  ;;  %788 = vmatpush.msrb.mxu3 %v1123_v2 }
 0x110   :  { %937 = vrcp.f32 %v100_v18  ;;  %v112_v24 = vand.u32 2147483648, %v100_v18  ;;  %v110_v26 = vand.u32 2147483647, %v100_v18  ;;  %vm106_vm4 = vweird.f32 %v100_v18  ;;  %789 = vmatpush.msrb.mxu3 %v1127_v3 }
 0x112   :  { %v113_v29 = vor.u32 1.1754944e-38, %v112_v24  ;;  %vm111_vm6 = vcmp.eq.f32.partialorder %v110_v26, 8.507059e+37  ;;  %790 = vmatpush.msrb.mxu3 %v1130_v4 }
 0x113   :  { %v293_v55 = vpop.f32.mrf.mxu2 }
 0x114   :  { %791 = vmatpush.msrb.mxu3 %v1143_v5  ;;  %v570_v38 = vpop.f32.mrf.mxu1  ;;  %v898_v13 = vmul.f32 -1.442695, %v293_v55 }
 0x115   :  { %v193_v33 = vpop.f32.mrf.mxu3  ;;  %912 = vmatmul.msk.f32.vlgmr.msra.gmra.mxu3 %vm72_vm2, %v570_v38 }
 0x116   :  { %v938_v21 = vpop.eup %937  ;;  %939 = vtanh.f32 %v193_v33  ;;  %v893_v45 = vmul.f32 -1.442695, %v193_v33 }
 0x117   :  { %v102_v22 = vmul.f32 %v938_v21, %v100_v18  ;;  %vm107_vm3 = vweird.f32 %v938_v21 }
 0x118   :  { %vm108_vm5 = vmor %vm106_vm4, %vm107_vm3  ;;  %941 = vpow2.f32 %v893_v45 }
 0x119   :  { %v103_v23 = vsub.f32 1.0, %v102_v22 }
 0x11b   :  { %v104_v25 = vmul.f32 %v938_v21, %v103_v23 }
 0x11c   :  { %v940_v34 = vpop.eup %939  ;;  %v770_v41 = vpop.f32.mrf.mxu1 }
 0x11d   :  { %v105_v27 = vadd.f32 %v938_v21, %v104_v25  ;;  %217 = vrot.lane.b32.xlu2 %v940_v34, %s1079_s14  ;;  %922 = vmatmul.msk.f32.vlgmr.msrb.gmra.mxu3 %vm72_vm2, %v770_v41  ;;  %v1228_v63 = vpop.f32.mrf.mxu2 }
 0x11e   :  { %v942_v46 = vpop.eup %941 }
 0x11f   :  { %v109_v30 = vsel %vm108_vm5, %v938_v21, %v105_v27  ;;  %v200_v47 = vadd.f32 1.0, %v942_v46 }
 0x120   :  { %v1199_v31 = vsel %vm111_vm6, %v113_v29, %v109_v30 }
 0x121   :  { %v125_v32 = vmul.f32 %v123_v28, %v1199_v31  ;;  %943 = vrcp.f32 %v200_v47  ;;  %vm206_vm7 = vweird.f32 %v200_v47  ;;  %v212_v52 = vand.u32 2147483648, %v200_v47 }
 0x122   :  { %v210_v54 = vand.u32 2147483647, %v200_v47  ;;  %945 = vtanh.f32 %v293_v55 }
 0x123   :  { %127 = vrot.lane.b32.xlu1 %v125_v32, %s1080_s0  ;;  %v213_v56 = vor.u32 1.1754944e-38, %v212_v52 }
 0x124   :  { %vm211_vm10 = vcmp.eq.f32.partialorder %v210_v54, 8.507059e+37 }
 0x125   :  { %v1236_v3 = vpop.f32.mrf.mxu2 }
 0x127   :  { %v944_v48 = vpop.eup %943 }
 0x128   :  { %v202_v49 = vmul.f32 %v944_v48, %v200_v47  ;;  %vm207_vm8 = vweird.f32 %v944_v48  ;;  %v946_v62 = vpop.eup %945 }
 0x129   :  { %vm208_vm9 = vmor %vm206_vm7, %vm207_vm8 }
 0x12a   :  { %v203_v50 = vsub.f32 1.0, %v202_v49 }
 0x12c   :  { %v204_v51 = vmul.f32 %v944_v48, %v203_v50 }
 0x12e   :  { %v205_v53 = vadd.f32 %v944_v48, %v204_v51 }
 0x130   :  { %v209_v57 = vsel %vm208_vm9, %v944_v48, %v205_v53  ;;  %v908_v53 = vmul.f32 -1.442695, %v1228_v63 }
 0x131   :  { %v1223_v59 = vsel %vm211_vm10, %v213_v56, %v209_v57 }
 0x177   :  { %v218_v8 = vpop.permute.xlu2 %217 }
 0x178   :  { %v220_v9 = vmul.f32 %v218_v8, %v1223_v59 }
 0x17e   :  { %v118_v39 = vpop.permute.xlu0 %117 }
 0x17f   :  { %v120_v42 = vmul.f32 %v118_v39, %v1199_v31 }
 0x190   :  { %v393_v58 = vpop.f32.mrf.mxu3 }
 0x191   :  { %947 = vtanh.f32 %v393_v58  ;;  %v903_v33 = vmul.f32 -1.442695, %v393_v58 }
 0x192   :  { %949 = vtanh.f32 %v1228_v63 }
 0x195   :  { %v128_v43 = vpop.permute.xlu1 %127 }
 0x196   :  { %v1219_v44 = vadd.f32 %v128_v43, %v120_v42 }
 0x197   :  { %v948_v0 = vpop.eup %947 }
 0x198   :  { %221 = vrot.lane.b32.xlu1 %v1219_v44, %s1079_s14  ;;  %v1232_v1 = vpop.f32.mrf.mxu3  ;;  %v950_v2 = vpop.eup %949 }
 0x199   :  { %951 = vtanh.f32 %v1232_v1 }
 0x19a   :  { %953 = vtanh.f32 %v1236_v3 }
 0x19f   :  { %v952_v4 = vpop.eup %951 }
 0x1a0   :  { %317 = vrot.lane.b32.xlu1 %v946_v62, %s1079_s14  ;;  %v1240_v5 = vpop.f32.mrf.mxu3  ;;  %v954_v6 = vpop.eup %953 }
 0x1a1   :  { %955 = vtanh.f32 %v1240_v5 }
 0x1a7   :  { %v956_v7 = vpop.eup %955 }
 0x1a8   :  { %417 = vrot.lane.b32.xlu1 %v948_v0, %s1079_s14 }
 0x1b0   :  { %517 = vrot.lane.b32.xlu1 %v950_v2, %s1079_s14 }
 0x1b8   :  { %617 = vrot.lane.b32.xlu1 %v952_v4, %s1079_s14 }
 0x1c0   :  { %717 = vrot.lane.b32.xlu1 %v954_v6, %s1079_s14 }
 0x1c8   :  { %817 = vrot.lane.b32.xlu1 %v956_v7, %s1079_s14 }
 0x20a   :  { %v222_v60 = vpop.permute.xlu1 %221 }
 0x20b   :  { %v224_v61 = vmul.f32 %v222_v60, %v1223_v59 }
 0x20d   :  { %226 = vrot.lane.b32.xlu2 %v224_v61, %s1080_s0 }
 0x212   :  { %v318_v28 = vpop.permute.xlu1 %317 }
 0x21a   :  { %v418_v49 = vpop.permute.xlu1 %417 }
 0x222   :  { %v518_v8 = vpop.permute.xlu1 %517 }
 0x267   :  { %v227_v10 = vpop.permute.xlu2 %226 }
 0x268   :  { %v1246_v11 = vadd.f32 %v227_v10, %v220_v9 }
 0x26a   :  { %957 = vtanh.f32 %v1246_v11  ;;  %321 = vrot.lane.b32.xlu0 %v1246_v11, %s1079_s14 }
 0x26b   :  { %959 = vpow2.f32 %v898_v13 }
 0x270   :  { %v958_v12 = vpop.eup %957 }
 0x271   :  { %232 = vrot.lane.b32.xlu1 %v958_v12, %s1078_s6  ;;  %v960_v14 = vpop.eup %959 }
 0x272   :  { %v300_v15 = vadd.f32 1.0, %v960_v14  ;;  %v913_v14 = vmul.f32 -1.442695, %v1232_v1 }
 0x274   :  { %961 = vrcp.f32 %v300_v15  ;;  %vm306_vm11 = vweird.f32 %v300_v15  ;;  %v312_v20 = vand.u32 2147483648, %v300_v15  ;;  %v310_v22 = vand.u32 2147483647, %v300_v15 }
 0x275   :  { %963 = vpow2.f32 %v903_v33 }
 0x276   :  { %v313_v23 = vor.u32 1.1754944e-38, %v312_v20  ;;  %vm311_vm14 = vcmp.eq.f32.partialorder %v310_v22, 8.507059e+37 }
 0x27a   :  { %v962_v16 = vpop.eup %961 }
 0x27b   :  { %v302_v17 = vmul.f32 %v962_v16, %v300_v15  ;;  %vm307_vm12 = vweird.f32 %v962_v16  ;;  %v964_v34 = vpop.eup %963 }
 0x27c   :  { %vm308_vm13 = vmor %vm306_vm11, %vm307_vm12  ;;  %v400_v35 = vadd.f32 1.0, %v964_v34 }
 0x27d   :  { %v303_v18 = vsub.f32 1.0, %v302_v17 }
 0x27e   :  { %965 = vrcp.f32 %v400_v35  ;;  %vm406_vm15 = vweird.f32 %v400_v35  ;;  %v412_v40 = vand.u32 2147483648, %v400_v35  ;;  %v410_v42 = vand.u32 2147483647, %v400_v35 }
 0x27f   :  { %v304_v19 = vmul.f32 %v962_v16, %v303_v18  ;;  %967 = vpow2.f32 %v908_v53 }
 0x280   :  { %v413_v43 = vor.u32 1.1754944e-38, %v412_v40  ;;  %vm411_vm2 = vcmp.eq.f32.partialorder %v410_v42, 8.507059e+37 }
 0x281   :  { %v305_v21 = vadd.f32 %v962_v16, %v304_v19 }
 0x283   :  { %v309_v24 = vsel %vm308_vm13, %v962_v16, %v305_v21 }
 0x284   :  { %v1252_v25 = vsel %vm311_vm14, %v313_v23, %v309_v24  ;;  %v966_v36 = vpop.eup %965 }
 0x285   :  { %v320_v29 = vmul.f32 %v318_v28, %v1252_v25  ;;  %v402_v37 = vmul.f32 %v966_v36, %v400_v35  ;;  %vm407_vm0 = vweird.f32 %v966_v36  ;;  %v968_v54 = vpop.eup %967  ;;  %v918_v35 = vmul.f32 -1.442695, %v1236_v3 }
 0x286   :  { %vm408_vm1 = vmor %vm406_vm15, %vm407_vm0  ;;  %v500_v55 = vadd.f32 1.0, %v968_v54 }
 0x287   :  { %v403_v38 = vsub.f32 1.0, %v402_v37 }
 0x288   :  { %969 = vrcp.f32 %v500_v55  ;;  %vm506_vm3 = vweird.f32 %v500_v55  ;;  %v512_v61 = vand.u32 2147483648, %v500_v55  ;;  %v510_v0 = vand.u32 2147483647, %v500_v55 }
 0x289   :  { %v404_v39 = vmul.f32 %v966_v36, %v403_v38 }
 0x28a   :  { %v513_v2 = vor.u32 1.1754944e-38, %v512_v61  ;;  %vm511_vm6 = vcmp.eq.f32.partialorder %v510_v0, 8.507059e+37 }
 0x28b   :  { %v405_v41 = vadd.f32 %v966_v36, %v404_v39 }
 0x28d   :  { %v409_v45 = vsel %vm408_vm1, %v966_v36, %v405_v41 }
 0x28e   :  { %v1261_v46 = vsel %vm411_vm2, %v413_v43, %v409_v45  ;;  %v970_v56 = vpop.eup %969 }
 0x28f   :  { %v420_v50 = vmul.f32 %v418_v49, %v1261_v46  ;;  %v502_v57 = vmul.f32 %v970_v56, %v500_v55  ;;  %vm507_vm4 = vweird.f32 %v970_v56 }
 0x290   :  { %vm508_vm5 = vmor %vm506_vm3, %vm507_vm4  ;;  %vm141_vm3 = vcmask 254976  }
 0x291   :  { %v503_v58 = vsub.f32 1.0, %v502_v57 }
 0x293   :  { %v504_v60 = vmul.f32 %v970_v56, %v503_v58 }
 0x295   :  { %v505_v62 = vadd.f32 %v970_v56, %v504_v60  ;;  %v923_v60 = vmul.f32 -1.442695, %v1240_v5 }
 0x297   :  { %v509_v4 = vsel %vm508_vm5, %v970_v56, %v505_v62 }
 0x298   :  { %v1271_v6 = vsel %vm511_vm6, %v513_v2, %v509_v4 }
 0x299   :  { %v520_v9 = vmul.f32 %v518_v8, %v1271_v6 }
 0x2dc   :  { %v322_v26 = vpop.permute.xlu0 %321 }
 0x2dd   :  { %v324_v27 = vmul.f32 %v322_v26, %v1252_v25 }
 0x2df   :  { %326 = vrot.lane.b32.xlu2 %v324_v27, %s1080_s0 }
 0x339   :  { %v327_v30 = vpop.permute.xlu2 %326 }
 0x33a   :  { %v1257_v32 = vadd.f32 %v327_v30, %v320_v29  ;;  %v618_v29 = vpop.permute.xlu1 %617 }
 0x33c   :  { %421 = vrot.lane.b32.xlu0 %v1257_v32, %s1079_s14 }
 0x3ae   :  { %v422_v47 = vpop.permute.xlu0 %421 }
 0x3af   :  { %v424_v48 = vmul.f32 %v422_v47, %v1261_v46 }
 0x3b1   :  { %426 = vrot.lane.b32.xlu2 %v424_v48, %s1080_s0 }
 0x40b   :  { %v427_v51 = vpop.permute.xlu2 %426 }
 0x40c   :  { %v1266_v52 = vadd.f32 %v427_v51, %v420_v50  ;;  %v718_v51 = vpop.permute.xlu1 %717 }
 0x40e   :  { %521 = vrot.lane.b32.xlu0 %v1266_v52, %s1079_s14 }
 0x480   :  { %v522_v63 = vpop.permute.xlu0 %521 }
 0x481   :  { %v524_v7 = vmul.f32 %v522_v63, %v1271_v6 }
 0x483   :  { %526 = vrot.lane.b32.xlu2 %v524_v7, %s1080_s0 }
 0x4dd   :  { %v527_v10 = vpop.permute.xlu2 %526 }
 0x4de   :  { %v1276_v12 = vadd.f32 %v527_v10, %v520_v9 }
 0x4e0   :  { %971 = vtanh.f32 %v1276_v12  ;;  %621 = vrot.lane.b32.xlu0 %v1276_v12, %s1079_s14 }
 0x4e1   :  { %973 = vpow2.f32 %v913_v14 }
 0x4e6   :  { %v972_v13 = vpop.eup %971 }
 0x4e7   :  { %532 = vrot.lane.b32.xlu1 %v972_v13, %s1078_s6  ;;  %v974_v15 = vpop.eup %973 }
 0x4e8   :  { %v600_v16 = vadd.f32 1.0, %v974_v15 }
 0x4ea   :  { %975 = vrcp.f32 %v600_v16  ;;  %vm606_vm7 = vweird.f32 %v600_v16  ;;  %v612_v21 = vand.u32 2147483648, %v600_v16  ;;  %v610_v23 = vand.u32 2147483647, %v600_v16 }
 0x4eb   :  { %977 = vpow2.f32 %v918_v35 }
 0x4ec   :  { %v613_v24 = vor.u32 1.1754944e-38, %v612_v21  ;;  %vm611_vm10 = vcmp.eq.f32.partialorder %v610_v23, 8.507059e+37 }
 0x4f0   :  { %v976_v17 = vpop.eup %975 }
 0x4f1   :  { %v602_v18 = vmul.f32 %v976_v17, %v600_v16  ;;  %vm607_vm8 = vweird.f32 %v976_v17  ;;  %v978_v36 = vpop.eup %977 }
 0x4f2   :  { %vm608_vm9 = vmor %vm606_vm7, %vm607_vm8  ;;  %v700_v37 = vadd.f32 1.0, %v978_v36 }
 0x4f3   :  { %v603_v19 = vsub.f32 1.0, %v602_v18 }
 0x4f4   :  { %979 = vrcp.f32 %v700_v37  ;;  %vm706_vm11 = vweird.f32 %v700_v37  ;;  %v712_v42 = vand.u32 2147483648, %v700_v37  ;;  %v710_v45 = vand.u32 2147483647, %v700_v37 }
 0x4f5   :  { %v604_v20 = vmul.f32 %v976_v17, %v603_v19  ;;  %981 = vtanh.f32 %v1219_v44 }
 0x4f6   :  { %v713_v47 = vor.u32 1.1754944e-38, %v712_v42  ;;  %vm711_vm14 = vcmp.eq.f32.partialorder %v710_v45, 8.507059e+37  ;;  %983 = vtanh.f32 %v1266_v52 }
 0x4f7   :  { %v605_v22 = vadd.f32 %v976_v17, %v604_v20  ;;  %v818_v20 = vpop.permute.xlu1 %817 }
 0x4f9   :  { %v609_v26 = vsel %vm608_vm9, %v976_v17, %v605_v22 }
 0x4fa   :  { %v1283_v27 = vsel %vm611_vm10, %v613_v24, %v609_v26  ;;  %v980_v38 = vpop.eup %979 }
 0x4fb   :  { %v620_v30 = vmul.f32 %v618_v29, %v1283_v27  ;;  %v702_v39 = vmul.f32 %v980_v38, %v700_v37  ;;  %vm707_vm12 = vweird.f32 %v980_v38  ;;  %v982_v56 = vpop.eup %981 }
 0x4fc   :  { %vm708_vm13 = vmor %vm706_vm11, %vm707_vm12  ;;  %v984_v57 = vpop.eup %983 }
 0x4fd   :  { %v703_v40 = vsub.f32 1.0, %v702_v39 }
 0x4ff   :  { %v704_v41 = vmul.f32 %v980_v38, %v703_v40 }
 0x501   :  { %v705_v43 = vadd.f32 %v980_v38, %v704_v41 }
 0x503   :  { %v709_v48 = vsel %vm708_vm13, %v980_v38, %v705_v43 }
 0x504   :  { %v714_v49 = vsel %vm711_vm14, %v713_v47, %v709_v48 }
 0x505   :  { %v720_v53 = vmul.f32 %v718_v51, %v714_v49 }
 0x552   :  { %v622_v1 = vpop.permute.xlu0 %621 }
 0x553   :  { %v624_v28 = vmul.f32 %v622_v1, %v1283_v27 }
 0x555   :  { %626 = vrot.lane.b32.xlu2 %v624_v28, %s1080_s0 }
 0x5af   :  { %v627_v33 = vpop.permute.xlu2 %626 }
 0x5b0   :  { %v1288_v34 = vadd.f32 %v627_v33, %v620_v30 }
 0x5b2   :  { %721 = vrot.lane.b32.xlu0 %v1288_v34, %s1079_s14 }
 0x624   :  { %v722_v50 = vpop.permute.xlu0 %721 }
 0x625   :  { %v724_v3 = vmul.f32 %v722_v50, %v714_v49 }
 0x627   :  { %726 = vrot.lane.b32.xlu2 %v724_v3, %s1080_s0 }
 0x681   :  { %v727_v54 = vpop.permute.xlu2 %726 }
 0x682   :  { %v729_v55 = vadd.f32 %v727_v54, %v720_v53 }
 0x684   :  { %821 = vrot.lane.b32.xlu0 %v729_v55, %s1079_s14  ;;  %985 = vtanh.f32 %v729_v55 }
 0x685   :  { %987 = vpow2.f32 %v923_v60 }
 0x68a   :  { %v986_v58 = vpop.eup %985 }
 0x68b   :  { %v988_v61 = vpop.eup %987 }
 0x68c   :  { %133 = vrot.lane.b32.xlu0 %v982_v56, %s1078_s6  ;;  %v800_v62 = vadd.f32 1.0, %v988_v61 }
 0x68e   :  { %989 = vrcp.f32 %v800_v62  ;;  %vm806_vm15 = vweird.f32 %v800_v62  ;;  %v812_v7 = vand.u32 2147483648, %v800_v62  ;;  %v810_v9 = vand.u32 2147483647, %v800_v62 }
 0x68f   :  { %991 = vtanh.f32 %v1257_v32 }
 0x690   :  { %v813_v10 = vor.u32 1.1754944e-38, %v812_v7  ;;  %vm811_vm2 = vcmp.eq.f32.partialorder %v810_v9, 8.507059e+37  ;;  %993 = vtanh.f32 %v1288_v34 }
 0x694   :  { %432 = vrot.lane.b32.xlu0 %v984_v57, %s1078_s6  ;;  %v990_v0 = vpop.eup %989 }
 0x695   :  { %v802_v2 = vmul.f32 %v990_v0, %v800_v62  ;;  %vm807_vm0 = vweird.f32 %v990_v0  ;;  %v992_v18 = vpop.eup %991 }
 0x696   :  { %vm808_vm1 = vmor %vm806_vm15, %vm807_vm0  ;;  %v994_v19 = vpop.eup %993 }
 0x697   :  { %v803_v4 = vsub.f32 1.0, %v802_v2 }
 0x699   :  { %v804_v63 = vmul.f32 %v990_v0, %v803_v4 }
 0x69b   :  { %v805_v8 = vadd.f32 %v990_v0, %v804_v63 }
 0x69c   :  { %732 = vrot.lane.b32.xlu0 %v986_v58, %s1078_s6 }
 0x69d   :  { %v809_v13 = vsel %vm808_vm1, %v990_v0, %v805_v8 }
 0x69e   :  { %v1301_v14 = vsel %vm811_vm2, %v813_v10, %v809_v13 }
 0x6f6   :  { %v822_v5 = vpop.permute.xlu0 %821 }
 0x6f7   :  { %v824_v15 = vmul.f32 %v822_v5, %v1301_v14 }
 0x6f9   :  { %826 = vrot.lane.b32.xlu2 %v824_v15, %s1080_s0 }
 0x6fe   :  { %v134_v16 = vpop.permute.xlu0 %133 }
 0x6ff   :  { %v136_v17 = vmul.f32 %v134_v16, %v1199_v31  ;;  %v233_v31 = vpop.permute.xlu1 %232 }
 0x700   :  { %v235_v23 = vmul.f32 %v233_v31, %v1223_v59  ;;  %v820_v59 = vmul.f32 %v818_v20, %v1301_v14 }
 0x701   :  { %332 = vrot.lane.b32.xlu2 %v992_v18, %s1078_s6  ;;  %144 = vrot.lane.b32.xlu0 %v136_v17, %s1079_s14 }
 0x706   :  { %v433_v21 = vpop.permute.xlu0 %432 }
 0x707   :  { %v435_v22 = vmul.f32 %v433_v21, %v1261_v46 }
 0x709   :  { %632 = vrot.lane.b32.xlu2 %v994_v19, %s1078_s6  ;;  %337 = vrot.lane.b32.xlu0 %v1257_v32, %s1080_s0  ;;  %v533_v32 = vpop.permute.xlu1 %532 }
 0x70e   :  { %v733_v24 = vpop.permute.xlu0 %732 }
 0x70f   :  { %v735_v26 = vmul.f32 %v733_v24, %v714_v49 }
 0x711   :  { %138 = vrot.lane.b32.xlu2 %v1219_v44, %s1080_s0  ;;  %443 = vrot.lane.b32.xlu0 %v435_v22, %s1079_s14  ;;  %v535_v44 = vmul.f32 %v533_v32, %v1271_v6 }
 0x719   :  { %243 = vrot.lane.b32.xlu2 %v235_v23, %s1079_s14  ;;  %637 = vrot.lane.b32.xlu0 %v1288_v34, %s1080_s0 }
 0x721   :  { %437 = vrot.lane.b32.xlu2 %v1266_v52, %s1080_s0  ;;  %743 = vrot.lane.b32.xlu0 %v735_v26, %s1079_s14 }
 0x729   :  { %543 = vrot.lane.b32.xlu2 %v535_v44, %s1079_s14 }
 0x731   :  { %737 = vrot.lane.b32.xlu2 %v729_v55, %s1080_s0 }
 0x753   :  { %v827_v46 = vpop.permute.xlu2 %826 }
 0x754   :  { %v829_v1 = vadd.f32 %v827_v46, %v820_v59 }
 0x756   :  { %995 = vtanh.f32 %v829_v1 }
 0x75b   :  { %v333_v28 = vpop.permute.xlu2 %332 }
 0x75c   :  { %v996_v29 = vpop.eup %995  ;;  %v335_v52 = vmul.f32 %v333_v28, %v1252_v25 }
 0x75d   :  { %832 = vrot.lane.b32.xlu1 %v996_v29, %s1078_s6 }
 0x763   :  { %v633_v30 = vpop.permute.xlu2 %632 }
 0x764   :  { %v635_v35 = vmul.f32 %v633_v30, %v1283_v27 }
 0x765   :  { %237 = vrot.lane.b32.xlu1 %v1246_v11, %s1080_s0 }
 0x76b   :  { %v139_v6 = vpop.permute.xlu2 %138 }
 0x76c   :  { %142 = vst.msk [vmem:[#allocation5] sm:$0x3] %vm141_vm3, %v139_v6 }
 0x76d   :  { %343 = vrot.lane.b32.xlu1 %v335_v52, %s1079_s14 }
 0x773   :  { %v244_v33 = vpop.permute.xlu2 %243  ;;  %v145_v34 = vpop.permute.xlu0 %144 }
 0x774   :  { %247 = vst.msk [vmem:[#allocation6 + $0x2] sm:$0x3] %vm141_vm3, %v244_v33 }
 0x775   :  { %147 = vst.msk [vmem:[#allocation6] sm:$0x3] %vm141_vm3, %v145_v34  ;;  %537 = vrot.lane.b32.xlu1 %v1276_v12, %s1080_s0 }
 0x77b   :  { %v438_v11 = vpop.permute.xlu2 %437  ;;  %v338_v36 = vpop.permute.xlu0 %337 }
 0x77c   :  { %441 = vst.msk [vmem:[#allocation5 + $0x6] sm:$0x3] %vm141_vm3, %v438_v11 }
 0x77d   :  { %341 = vst.msk [vmem:[#allocation5 + $0x4] sm:$0x3] %vm141_vm3, %v338_v36  ;;  %643 = vrot.lane.b32.xlu1 %v635_v35, %s1079_s14 }
 0x783   :  { %v544_v25 = vpop.permute.xlu2 %543  ;;  %v444_v37 = vpop.permute.xlu0 %443 }
 0x784   :  { %547 = vst.msk [vmem:[#allocation6 + $0x8] sm:$0x3] %vm141_vm3, %v544_v25 }
 0x785   :  { %447 = vst.msk [vmem:[#allocation6 + $0x6] sm:$0x3] %vm141_vm3, %v444_v37  ;;  %837 = vrot.lane.b32.xlu1 %v829_v1, %s1080_s0 }
 0x78b   :  { %v738_v38 = vpop.permute.xlu2 %737  ;;  %v638_v12 = vpop.permute.xlu0 %637 }
 0x78c   :  { %741 = vst.msk [vmem:[#allocation5 + $0xc] sm:$0x3] %vm141_vm3, %v738_v38 }
 0x78d   :  { %641 = vst.msk [vmem:[#allocation5 + $0xa] sm:$0x3] %vm141_vm3, %v638_v12 }
 0x793   :  { %v744_v27 = vpop.permute.xlu0 %743 }
 0x794   :  { %747 = vst.msk [vmem:[#allocation6 + $0xc] sm:$0x3] %vm141_vm3, %v744_v27 }
 0x7cf   :  { %v833_v39 = vpop.permute.xlu1 %832 }
 0x7d0   :  { %v835_v40 = vmul.f32 %v833_v39, %v1301_v14 }
 0x7d2   :  { %843 = vrot.lane.b32.xlu2 %v835_v40, %s1079_s14 }
 0x7d7   :  { %v238_v41 = vpop.permute.xlu1 %237 }
 0x7d8   :  { %241 = vst.msk [vmem:[#allocation5 + $0x2] sm:$0x3] %vm141_vm3, %v238_v41 }
 0x7df   :  { %v344_v42 = vpop.permute.xlu1 %343 }
 0x7e0   :  { %347 = vst.msk [vmem:[#allocation6 + $0x4] sm:$0x3] %vm141_vm3, %v344_v42 }
 0x7e7   :  { %v538_v43 = vpop.permute.xlu1 %537 }
 0x7e8   :  { %541 = vst.msk [vmem:[#allocation5 + $0x8] sm:$0x3] %vm141_vm3, %v538_v43 }
 0x7ef   :  { %v644_v45 = vpop.permute.xlu1 %643 }
 0x7f0   :  { %647 = vst.msk [vmem:[#allocation6 + $0xa] sm:$0x3] %vm141_vm3, %v644_v45 }
 0x7f7   :  { %v838_v47 = vpop.permute.xlu1 %837 }
 0x7f8   :  { %841 = vst.msk [vmem:[#allocation5 + $0xe] sm:$0x3] %vm141_vm3, %v838_v47 }
 0x7f9   :  { %860 = dma.vmem_to_hbm [thread:$0]  %s853_s20, 256, %s855_s23, [#allocation4], %s1079_s14, %s1079_s14, %s1082_s24  }
 0x82c   :  { %v844_v48 = vpop.permute.xlu2 %843 }
 0x82d   :  { %847 = vst.msk [vmem:[#allocation6 + $0xe] sm:$0x3] %vm141_vm3, %v844_v48 }
 0x82e   :  { %873 = dma.vmem_to_hbm [thread:$0]  %s866_s26, 256, %s868_s1, [#allocation7], %s1079_s14, %s1079_s14, %s1082_s24  }
 0x82f   :  { %1071 = dma.done.wait [#allocation4], 256  }
 0x830   :  { %1072 = vsyncadd [#allocation4], 4294967040 }
 0x831   :  { %1073 = dma.done.wait [#allocation7], 256  }
 0x832   :  { %1074 = vsyncadd [#allocation7], 4294967040 }
 0x833   :  { %882 = vsyncpa [#allocation3], 1 }
 0x834   :  { %883 = vsyncpa [#allocation4], 1 }
 0x835   :  { %884 = vsyncpa [#allocation7], 1 }

</bundles_post_ra>
